<compile_context>
chip_gen: v7x
topology: tpu7x:2x2x1
jax: 0.10.0
libtpu: 0.0.40
codegen_flags: <defaults>
</compile_context>

<pallas_src>
import jax
import jax.numpy as jnp
from jax.experimental import pallas as pl
from jax.experimental.pallas import tpu as pltpu


def _round_up(x, m):
    return (x + m - 1) // m * m


def _pad_to(x, shape):
    pads = [(0, s - d) for d, s in zip(x.shape, shape)]
    if any(hi for _, hi in pads):
        x = jnp.pad(x, pads)
    return x


def _vmem_capacity_bytes():
    try:
        return int(pltpu.get_tpu_info().vmem_capacity_bytes)
    except Exception:
        return 64 * 1024 * 1024   # conservative (v7x) fallback


def _joint_kernel(enc_ref, pred_ref, w_ref, b_ref, out_ref, x_ref):
    # enc_ref:  (1, tT, Dp)  native dtype     pred_ref: (1, tU, Dp) native dtype
    # w_ref:    (Dp, tV)     compute dtype    b_ref:    (1, tV)     f32
    # out_ref:  (1, tT, tU, tV)
    # x_ref:    (tT*tU, Dp)  compute dtype VMEM scratch, persistent across the
    #           inner V axis.
    tT = enc_ref.shape[1]
    tU = pred_ref.shape[1]
    Dp = enc_ref.shape[2]
    tV = w_ref.shape[1]

    # SiLU is computed once per (t, b, u) tile — V is the innermost grid axis —
    # and re-used from VMEM for every V tile (amortizes the VPU/EUP work).
    @pl.when(pl.program_id(3) == 0)
    def _():
        enc = enc_ref[0].astype(jnp.float32)          # (tT, Dp)
        pred = pred_ref[0].astype(jnp.float32)        # (tU, Dp)
        x = enc[:, None, :] + pred[None, :, :]        # (tT, tU, Dp)
        x = x * jax.nn.sigmoid(x)                     # SiLU in f32 (VPU + EUP)
        # Layout-free reshape: tU % 8 == 0 and Dp % 128 == 0.
        x_ref[...] = x.reshape(tT * tU, Dp).astype(x_ref.dtype)

    # MXU matmul, f32 accumulate, bias add, lane-dense (tV % 128 == 0) store.
    y = jnp.dot(x_ref[...], w_ref[...], preferred_element_type=jnp.float32)
    y = y + b_ref[...]
    out_ref[...] = y.reshape(1, tT, tU, tV).astype(out_ref.dtype)


def joint_network(enc_outs, pred_outs, weight, bias, *,
                  compute_dtype=jnp.bfloat16, out_dtype=None,
                  target_rows=512):
    """RNN-T joint.  enc:(B,T,D)  pred:(B,U,D)  weight:(D,V)  bias:(V,).

    `out_dtype` defaults to the encoder dtype; pass jnp.bfloat16 to halve the
    (dominant) output HBM traffic on v5e/v6e.
    """
    B, T, D = enc_outs.shape
    _, U, _ = pred_outs.shape
    V = weight.shape[1]
    if out_dtype is None:
        out_dtype = enc_outs.dtype

    in_b = jnp.dtype(enc_outs.dtype).itemsize
    cd = jnp.dtype(compute_dtype).itemsize
    ob = jnp.dtype(out_dtype).itemsize
    f32 = 4

    Dp = _round_up(D, 128)

    # ---- T/U tiling: tT*tU ~ target_rows MXU rows; T/U padded up to the tile
    # size so awkward factors never degenerate tT to 8.
    tU = min(32, _round_up(U, 8))
    Up = _round_up(U, tU)
    tT = max(8, (target_rows // tU) // 8 * 8)
    tT = min(tT, _round_up(T, 8))
    Tp = _round_up(T, tT)

    # ---- V tiling (generation-aware via VMEM capacity): keep the whole
    # (Dp, Vp) weight resident when it fits (one weight DMA total); otherwise
    # stream >=256-wide tiles along the inner V axis.
    vmem_cap = _vmem_capacity_bytes()
    budget = int(0.55 * vmem_cap)

    def footprint(tT_, tU_, tV_):
        return (2 * tT_ * Dp * in_b            # enc tile (double-buffered)
                + 2 * tU_ * Dp * in_b          # pred tile
                + 2 * Dp * tV_ * cd            # weight tile
                + 2 * tV_ * f32                # bias tile
                + 2 * tT_ * tU_ * tV_ * ob     # output tile
                + tT_ * tU_ * Dp * (cd + f32)  # SiLU scratch + f32 temp
                + tT_ * tU_ * tV_ * f32)       # f32 matmul accumulator

    Vp_res = _round_up(V, 128)
    if footprint(tT, tU, Vp_res) <= budget:
        tV, Vp = Vp_res, Vp_res                # weight fully resident
    else:
        tV = 256                               # 256-wide for v6e/v7x MXU
        Vp = _round_up(V, tV)
        while footprint(tT, tU, tV) > budget and tT > 8:
            tT = max(8, tT // 2)
            Tp = _round_up(T, tT)

    # Leading axis = T tiles (not B) for balanced megacore sharding on v7x;
    # inner V axis is "arbitrary" so the SiLU scratch reuse stays on-core.
    grid = (Tp // tT, B, Up // tU, Vp // tV)

    enc_p = _pad_to(enc_outs, (B, Tp, Dp))                       # native dtype
    pred_p = _pad_to(pred_outs, (B, Up, Dp))                     # native dtype
    w_p = _pad_to(weight, (Dp, Vp)).astype(compute_dtype)
    b_p = _pad_to(bias.reshape(1, V), (1, Vp)).astype(jnp.float32)

    fp = footprint(tT, tU, tV)
    vmem_limit = int(min(max(int(1.5 * fp), 16 * 1024 * 1024),
                         int(0.8 * vmem_cap)))

    n_tu_tiles = B * (Tp // tT) * (Up // tU)
    w_fetches = 1 if Vp == tV else n_tu_tiles
    cost = pl.CostEstimate(
        flops=2 * B * Tp * Up * Dp * Vp + 4 * B * Tp * Up * Dp,
        transcendentals=B * Tp * Up * Dp,                 # SiLU computed once
        bytes_accessed=int(B * Tp * Dp * in_b
                           + (Tp // tT) * B * Up * Dp * in_b
                           + w_fetches * Dp * Vp * cd + Vp * f32
                           + B * Tp * Up * Vp * ob),
    )

    out_p = pl.pallas_call(
        _joint_kernel,
        out_shape=jax.ShapeDtypeStruct((B, Tp, Up, Vp), out_dtype),
        grid_spec=pltpu.PrefetchScalarGridSpec(
            num_scalar_prefetch=0,
            grid=grid,
            in_specs=[
                pl.BlockSpec((1, tT, Dp), lambda t, b, u, v: (b, t, 0)),
                pl.BlockSpec((1, tU, Dp), lambda t, b, u, v: (b, u, 0)),
                pl.BlockSpec((Dp, tV), lambda t, b, u, v: (0, v)),
                pl.BlockSpec((1, tV), lambda t, b, u, v: (0, v)),
            ],
            out_specs=pl.BlockSpec(
                (1, tT, tU, tV), lambda t, b, u, v: (b, t, u, v)),
            scratch_shapes=[pltpu.VMEM((tT * tU, Dp), compute_dtype)],
        ),
        compiler_params=pltpu.CompilerParams(
            dimension_semantics=("parallel", "parallel", "parallel",
                                 "arbitrary"),
            vmem_limit_bytes=vmem_limit,
        ),
        cost_estimate=cost,
    )(enc_p, pred_p, w_p, b_p)

    # Un-pad only when padding was actually needed (padded T/U rows hold
    # garbage = silu(pad)·W, so the slice — or a consumer-side mask — is
    # required whenever padding is active).  Aligned shapes skip it entirely.
    if (Tp, Up, Vp) != (T, U, V):
        out_p = out_p[:, :T, :U, :V]
    return out_p


def joint_network_ref(enc_outs, pred_outs, weight, bias,
                      compute_dtype=jnp.float32):
    x = enc_outs[:, :, None, :] + pred_outs[:, None, :, :]
    x = x * jax.nn.sigmoid(x)
    y = jnp.einsum("btud,dv->btuv",
                   x.astype(compute_dtype), weight.astype(compute_dtype),
                   preferred_element_type=jnp.float32)
    return (y + bias).astype(enc_outs.dtype)


if __name__ == "__main__":
    key = jax.random.PRNGKey(0)
    k_enc, k_pred, k_w, k_b = jax.random.split(key, 4)

    B, T, U, D, V = 2, 16, 8, 32, 16

    enc_outs = jax.random.normal(k_enc, (B, T, D), dtype=jnp.float32)
    pred_outs = jax.random.normal(k_pred, (B, U, D), dtype=jnp.float32)
    # nn.Linear(input_dim=D, output_dim=V): weight (V, D), bias (V,);
    # stored pre-transposed as (D, V) for the kernel.
    w_torch = jax.random.normal(k_w, (V, D), dtype=jnp.float32) / jnp.sqrt(D)
    bias = jax.random.normal(k_b, (V,), dtype=jnp.float32) * 0.01
    weight = w_torch.T

    out = joint_network(enc_outs, pred_outs, weight, bias)
    out = jax.block_until_ready(out)
    assert out.shape == (B, T, U, V)
    assert out.dtype == enc_outs.dtype

    # Tight check against a reference that uses the same bf16 MXU operands.
    ref_bf16 = joint_network_ref(enc_outs, pred_outs, weight, bias,
                                 compute_dtype=jnp.bfloat16)
    assert jnp.allclose(out, ref_bf16, atol=1e-4, rtol=1e-4)

    # Sanity check against the pure-f32 reference (bf16 matmul tolerance).
    ref_f32 = joint_network_ref(enc_outs, pred_outs, weight, bias,
                                compute_dtype=jnp.float32)
    assert jnp.allclose(out, ref_f32, atol=5e-2, rtol=5e-2)

    # bf16-output path (recommended on v5e/v6e to halve output HBM traffic).
    out_bf16 = joint_network(enc_outs, pred_outs, weight, bias,
                             out_dtype=jnp.bfloat16)
    out_bf16 = jax.block_until_ready(out_bf16)
    assert out_bf16.shape == (B, T, U, V)
    assert out_bf16.dtype == jnp.bfloat16
    assert jnp.allclose(out_bf16.astype(jnp.float32), ref_f32,
                        atol=1e-1, rtol=1e-1)

    print("KERNEL_OK")
</pallas_src>

<mosaic_0001>
module attributes {stable_mosaic.version = 11 : i64} {
  func.func @_joint_kernel(%arg0: i32, %arg1: i32, %arg2: i32, %arg3: i32, %arg4: memref<1x16x128xf32, #tpu.memory_space<vmem>>, %arg5: memref<1x8x128xf32, #tpu.memory_space<vmem>>, %arg6: memref<128x128xbf16, #tpu.memory_space<vmem>>, %arg7: memref<1x128xf32, #tpu.memory_space<vmem>>, %arg8: memref<1x16x8x128xf32, #tpu.memory_space<vmem>>, %arg9: memref<128x128xbf16, #tpu.memory_space<vmem>>) attributes {dimension_semantics = [#tpu.dimension_semantics<parallel>, #tpu.dimension_semantics<parallel>, #tpu.dimension_semantics<parallel>, #tpu.dimension_semantics<arbitrary>], iteration_bounds = array<i64: 1, 2, 1, 1>, scalar_prefetch = 0 : i64, scratch_operands = 1 : i64, tpu.core_type = #tpu.core_type<tc>, window_params = [{transform_indices = @transform_0, window_bounds = array<i64: 1, 16, 128>}, {transform_indices = @transform_1, window_bounds = array<i64: 1, 8, 128>}, {transform_indices = @transform_2, window_bounds = array<i64: 128, 128>}, {transform_indices = @transform_3, window_bounds = array<i64: 1, 128>}, {transform_indices = @transform_4, window_bounds = array<i64: 1, 16, 8, 128>}]} {
    %c0_i32 = arith.constant 0 : i32
    %0 = arith.cmpi eq, %arg3, %c0_i32 : i32
    %1 = arith.extui %0 : i1 to i32
    %c0_i32_0 = arith.constant 0 : i32
    %2 = arith.cmpi ne, %1, %c0_i32_0 : i32
    scf.if %2 {
      %c0_10 = arith.constant 0 : index
      %c0_11 = arith.constant 0 : index
      %c0_12 = arith.constant 0 : index
      %11 = vector.load %arg4[%c0_10, %c0_11, %c0_12] : memref<1x16x128xf32, #tpu.memory_space<vmem>>, vector<1x16x128xf32>
      %12 = vector.shape_cast %11 : vector<1x16x128xf32> to vector<16x128xf32>
      %c0_13 = arith.constant 0 : index
      %c0_14 = arith.constant 0 : index
      %c0_15 = arith.constant 0 : index
      %13 = vector.load %arg5[%c0_13, %c0_14, %c0_15] : memref<1x8x128xf32, #tpu.memory_space<vmem>>, vector<1x8x128xf32>
      %14 = vector.shape_cast %13 : vector<1x8x128xf32> to vector<8x128xf32>
      %15 = vector.shape_cast %12 : vector<16x128xf32> to vector<16x1x128xf32>
      %16 = vector.shape_cast %14 : vector<8x128xf32> to vector<1x8x128xf32>
      %17 = vector.broadcast %15 : vector<16x1x128xf32> to vector<16x8x128xf32>
      %18 = vector.broadcast %16 : vector<1x8x128xf32> to vector<16x8x128xf32>
      %19 = arith.addf %17, %18 : vector<16x8x128xf32>
      %20 = arith.negf %19 : vector<16x8x128xf32>
      %21 = math.exp %20 : vector<16x8x128xf32>
      %cst_16 = arith.constant 1.000000e+00 : f32
      %22 = vector.broadcast %cst_16 : f32 to vector<16x8x128xf32>
      %23 = arith.addf %22, %21 : vector<16x8x128xf32>
      %24 = arith.divf %22, %23 : vector<16x8x128xf32>
      %25 = arith.mulf %19, %24 : vector<16x8x128xf32>
      %26 = vector.shape_cast %25 : vector<16x8x128xf32> to vector<128x128xf32>
      %27 = arith.truncf %26 : vector<128x128xf32> to vector<128x128xbf16>
      %c0_17 = arith.constant 0 : index
      %c0_18 = arith.constant 0 : index
      %28 = vector.load %arg9[%c0_17, %c0_18] : memref<128x128xbf16, #tpu.memory_space<vmem>>, vector<128x128xbf16>
      tpu.vector_store %arg9[%c0_17, %c0_18], %27 {strides = array<i32>} : memref<128x128xbf16, #tpu.memory_space<vmem>>, vector<128x128xbf16>,
    } else {
    }
    %c0 = arith.constant 0 : index
    %c0_1 = arith.constant 0 : index
    %3 = vector.load %arg9[%c0, %c0_1] : memref<128x128xbf16, #tpu.memory_space<vmem>>, vector<128x128xbf16>
    %c0_2 = arith.constant 0 : index
    %c0_3 = arith.constant 0 : index
    %4 = vector.load %arg6[%c0_2, %c0_3] : memref<128x128xbf16, #tpu.memory_space<vmem>>, vector<128x128xbf16>
    %cst = arith.constant dense<0.000000e+00> : vector<128x128xf32>
    %5 = tpu.matmul %3, %4, %cst {dimension_numbers = #tpu.dot_dimension_numbers<[1], [0], [0], [1], [0, 0, 1, 1], [], []>} : vector<128x128xbf16>, vector<128x128xbf16>, vector<128x128xf32> -> vector<128x128xf32>
    %c0_4 = arith.constant 0 : index
    %c0_5 = arith.constant 0 : index
    %6 = vector.load %arg7[%c0_4, %c0_5] : memref<1x128xf32, #tpu.memory_space<vmem>>, vector<1x128xf32>
    %7 = vector.broadcast %6 : vector<1x128xf32> to vector<128x128xf32>
    %8 = arith.addf %5, %7 : vector<128x128xf32>
    %9 = vector.shape_cast %8 : vector<128x128xf32> to vector<1x16x8x128xf32>
    %c0_6 = arith.constant 0 : index
    %c0_7 = arith.constant 0 : index
    %c0_8 = arith.constant 0 : index
    %c0_9 = arith.constant 0 : index
    %10 = vector.load %arg8[%c0_6, %c0_7, %c0_8, %c0_9] : memref<1x16x8x128xf32, #tpu.memory_space<vmem>>, vector<1x16x8x128xf32>
    tpu.vector_store %arg8[%c0_6, %c0_7, %c0_8, %c0_9], %9 {strides = array<i32>} : memref<1x16x8x128xf32, #tpu.memory_space<vmem>>, vector<1x16x8x128xf32>,
    return
  }
  func.func @transform_0(%arg0: i32, %arg1: i32, %arg2: i32, %arg3: i32) -> (i32, i32, i32) {
    %c0_i32 = arith.constant 0 : i32
    %c0_i32_0 = arith.constant 0 : i32
    return %arg1, %arg0, %c0_i32 : i32, i32, i32
  }
  func.func @transform_1(%arg0: i32, %arg1: i32, %arg2: i32, %arg3: i32) -> (i32, i32, i32) {
    %c0_i32 = arith.constant 0 : i32
    %c0_i32_0 = arith.constant 0 : i32
    return %arg1, %arg2, %c0_i32 : i32, i32, i32
  }
  func.func @transform_2(%arg0: i32, %arg1: i32, %arg2: i32, %arg3: i32) -> (i32, i32) {
    %c0_i32 = arith.constant 0 : i32
    %c0_i32_0 = arith.constant 0 : i32
    return %c0_i32, %arg3 : i32, i32
  }
  func.func @transform_3(%arg0: i32, %arg1: i32, %arg2: i32, %arg3: i32) -> (i32, i32) {
    %c0_i32 = arith.constant 0 : i32
    %c0_i32_0 = arith.constant 0 : i32
    return %c0_i32, %arg3 : i32, i32
  }
  func.func @transform_4(%arg0: i32, %arg1: i32, %arg2: i32, %arg3: i32) -> (i32, i32, i32, i32) {
    %c0_i32 = arith.constant 0 : i32
    return %arg1, %arg0, %arg2, %arg3 : i32, i32, i32, i32
  }
}

</mosaic_0001>

<bundles_post_ra>
// kernel: tpu_custom_call.1
= control target key start
LH: loop header
LB: loop body
LE: loop exit
PB: predicated region body
PF: predicated region fallthrough
CT: control target
= control target key end

     0   :  { %s1907_s0 = inlined_call_operand.hbm [shape: f32[2,16,128], index: 0, kind: input, shape index: {}]   ;;  %s1908_s1 = inlined_call_operand.hbm [shape: f32[2,8,128], index: 1, kind: input, shape index: {}]   ;;  %s1909_s2 = inlined_call_operand.hbm [shape: bf16[128,128], index: 2, kind: input, shape index: {}]   ;;  %s1910_s3 = inlined_call_operand.vmem [shape: f32[1,128], index: 3, kind: input, shape index: {}]   ;;  %s1911_s4 = inlined_call_operand.hbm [shape: f32[2,16,8,128], index: 4, kind: output, shape index: {}]  }
   0x1   :  { %1917 = sst [smem:[#allocation16_spill]] %s1907_s0 }
   0x2   :  { %1918 = sst [smem:[#allocation17_spill]] %s1909_s2 }
   0x3   :  { %9 = vsyncpa [#allocation4], 0 }
   0x4   :  { %11 = vsyncpa [#allocation4 + $0x1], 0 }
   0x5   :  { %12 = vsyncpa [#allocation7], 0 }
   0x6   :  { %14 = vsyncpa [#allocation7 + $0x1], 0 }
   0x7   :  { %15 = vsyncpa [#allocation5], 0 }
   0x8   :  { %17 = vsyncpa [#allocation5 + $0x1], 0  ;;  %s1500_s15 = smov 0   ;;  %s1502_s16 = smov 0  }
   0x9   :  { %s1504_s17 = smov 0   ;;  %s1506_s18 = smov 0  }
   0xa   :  { %s1508_s19 = smov 0   ;;  %s1510_s20 = smov 0  }
   0xb LB: > { %s1531_s21 = sadd.s32 4294967295, %s1462_s20   ;;  %s1014_s22 = sadd.s32 4294967294, %s1462_s20   ;;  %s1462_s20 = sphi %s1510_s20, %s23_s20   ;;  %s1458_s19 = sphi %s1508_s19, %s1945_s19   ;;  %s1454_s18 = sphi %s1506_s18, %s1944_s18   ;;  %s1450_s17 = sphi %s1504_s17, %s1943_s17   ;;  %s1446_s16 = sphi %s1502_s16, %s1942_s16   ;;  %s1442_s15 = sphi %s1500_s15, %s1941_s15  }
   0xc   : > { %p71_p0 = scmp.ne.s32.totalorder %s1446_s16, %s1442_s15  ;;  %p1912_p1 = scmp.eq.s32.totalorder %s1531_s21, 0 }
   0xd   : > { %p187_p3 = scmp.eq.s32.totalorder %s1014_s22, 1  ;;  %p1015_p5 = scmp.ge.s32.totalorder %s1462_s20, 1 }
   0xe   : > { %p1540_p4 = por %p1912_p1, %p71_p0  ;;  %p194_p7 = scmp.lt.s32.totalorder %s1462_s20, 3 }
   0xf   : > { %p1545_p6 = por %p187_p3, %p71_p0  ;;  %s1464_s26 = smov [#allocation8]  }
  0x10   : > { %s1919_s23 = scalar_select %p1540_p4, 1, 0 }
  0x11   : > { %s1920_s24 = scalar_select %p1545_p6, 1, 0 }
  0x12   : > { %p1550_p8 = pnand %p1015_p5, %p194_p7  ;;  %s208_s27 = sshll.u32 %s1464_s26, 4  ;;  %s209_s27 = int_to_ptr.vmem [resolvable:$true] %s208_s27 }
  0x13   : > { %s45_s29 = sadd.s32 1, %s1458_s19  ;;  %s1923_s2 = sld [smem:[#allocation17_spill]] }
  0x14   : > { %s1921_s25 = scalar_select %p1550_p8, 1, 0 }
  0x15   : > { %p1135_p9 = pneg %p1550_p8 }
  0x17   : > { %p1559_p11 = pnand %p1135_p9, %p1912_p1 }
  0x19   : > { %s1284_s6 = scalar_lea.hbm %s1923_s2, 1024  ;;  %p1286_p13 = pneg %p1559_p11 }
  0x1a   : > { %p1285_p12 = scmp.ne.s32.totalorder %s1923_s2, %s1284_s6  ;;  %p1291_p5 = scmp.lt.u32.totalorder %s1284_s6, %s1923_s2 }
  0x1c   : > { %p1287_p0 = pnand %p1286_p13, %p1285_p12 }
  0x1e   : > { %p1288_p3 = pneg %p1287_p0 }
  0x20   : > { %p1293_p7 = pnand %p1291_p5, %p1288_p3 }
  0x22   : > { %1296 = shalt.err (!%p1293_p7)
}
  0x23   : > { %s1297_s11 = scalar_lea.vmem %s209_s27, 1024  ;;  %p1305_p2 = scmp.lt.s32.totalorder %s209_s27, %s209_s27 }
  0x24   : > { %p1298_p9 = scmp.ne.s32.totalorder %s209_s27, %s1297_s11  ;;  %p1306_p6 = scmp.lt.s32.totalorder %s1297_s11, %s1297_s11 }
  0x26   : > { %p1300_p10 = pnand %p1298_p9, %p1286_p13  ;;  %p1307_p4 = por %p1306_p6, %p1305_p2 }
  0x28   : > { %p1301_p1 = pneg %p1300_p10 }
  0x2a   : > { %p1308_p8 = pnand %p1307_p4, %p1301_p1 }
  0x2c   : > { %1311 = shalt.err (!%p1308_p8)
}
  0x2d   : > { %s1465_s12 = smov 64   ;;  %s1466_s13 = smov 4  }
  0x2e   : > { %1138 = dma.hbm_to_vmem [thread:$0]  (!%p1559_p11), %s1923_s2, 1024, %s209_s27, [#allocation7], %s1465_s12, %s1465_s12, %s1466_s13  }
  0x2f   : > { %p47_p1 = scmp.ge.s32.totalorder %s45_s29, 2  ;;  %s58_s26 = sadd.s32 1, %s1450_s17 }
  0x30   : > { %p65_p2 = scmp.ne.s32.totalorder %s1450_s17, %s1446_s16  ;;  %p66_p4 = scmp.eq.s32.totalorder %s1462_s20, 0 }
  0x31   : > { %s1947_s29 = smov (%p47_p1, %s45_s29), 0  ;;  %p1926_p8 = scmp.eq.s32.totalorder %s1531_s21, 1 }
  0x32   : > { %1924 = sst [smem:[#allocation14_spill]] %s1947_s29  ;;  %p1586_p6 = por %p66_p4, %p65_p2 }
  0x33   : > { %p1592_p10 = por %p1926_p8, %p65_p2  ;;  %s53_s5 = ssub.s32 %s1458_s19, %s1947_s29 }
  0x34   : > { %p1151_p11 = scmp.lt.s32.totalorder %s1462_s20, 2  ;;  %p56_p12 = scmp.eq.s32.totalorder %s53_s5, 0 }
  0x35   : > { %s1927_s28 = scalar_select %p1592_p10, 1, 0 }
  0x36   : > { %s1600_s27 = sand.u32 1, %s1450_s17   ;;  %s1059_s8 = sshll.u32 %s1458_s19, 8 }
  0x37   : > { %s1019_s6 = sshll.u32 %s1600_s27, 4  ;;  %s1929_s0 = sld [smem:[#allocation16_spill]] }
  0x38   : > { %s1604_s7 = scalar_select %p56_p12, %s1450_s17, %s58_s26  }
  0x39   : > { %s232_s12 = scalar_lea.vmem [#allocation3], %s1019_s6  ;;  %p1616_p13 = pnand %p1151_p11, %p1586_p6 }
  0x3a   : > { %1928 = sst [smem:[#allocation15_spill]] %s1604_s7  ;;  %s241_s13 = sshll.u32 %s232_s12, 4  ;;  %s1612_s13 = int_to_ptr.vmem [resolvable:$true] %s241_s13 }
  0x3b   : > { %s229_s26 = scalar_lea.sflag [#allocation4], %s1600_s27  ;;  %p1314_p3 = pneg %p1616_p13 }
  0x3d   : > { %s1610_s11 = scalar_lea.hbm %s1929_s0, %s1059_s8  ;;  %s1317_s30 = scalar_lea.hbm %s1929_s0, 512 }
  0x3e   : > { %s1312_s5 = scalar_lea.hbm %s1610_s11, 256  ;;  %p1318_p9 = scmp.lt.u32.totalorder %s1610_s11, %s1929_s0 }
  0x3f   : > { %p1313_p0 = scmp.ne.s32.totalorder %s1610_s11, %s1312_s5  ;;  %p1319_p1 = scmp.lt.u32.totalorder %s1317_s30, %s1312_s5 }
  0x40   : > { %p1321_p4 = scmp.lt.u32.totalorder %s1312_s5, %s1610_s11 }
  0x41   : > { %p1315_p5 = pnand %p1314_p3, %p1313_p0  ;;  %p1320_p2 = por %p1319_p1, %p1318_p9 }
  0x43   : > { %p1316_p7 = pneg %p1315_p5  ;;  %p1322_p6 = por %p1321_p4, %p1320_p2 }
  0x45   : > { %p1323_p8 = pnand %p1322_p6, %p1316_p7 }
  0x47   : > { %1326 = shalt.err (!%p1323_p8)
}
  0x48   : > { %s1327_s12 = scalar_lea.vmem %s1612_s13, 256  ;;  %s1467_s6 = smov [#allocation3]  }
  0x49   : > { %p1328_p11 = scmp.ne.s32.totalorder %s1612_s13, %s1327_s12  ;;  %s1332_s8 = sshll.u32 %s1467_s6, 4  ;;  %s1333_s8 = int_to_ptr.vmem [resolvable:$false] %s1332_s8 }
  0x4a   : > { %s1334_s9 = scalar_lea.vmem %s1333_s8, 512  ;;  %p1335_p5 = scmp.lt.s32.totalorder %s1612_s13, %s1333_s8 }
  0x4b   : > { %p1330_p12 = pnand %p1328_p11, %p1314_p3  ;;  %p1336_p9 = scmp.lt.s32.totalorder %s1334_s9, %s1327_s12 }
  0x4d   : > { %p1331_p0 = pneg %p1330_p12  ;;  %p1337_p1 = por %p1336_p9, %p1335_p5 }
  0x4f   : > { %p1338_p2 = pnand %p1337_p1, %p1331_p0 }
  0x51   : > { %1341 = shalt.err (!%p1338_p2)
}
  0x52   : > { %s1468_s5 = smov 128   ;;  %s1469_s30 = smov 8  }
  0x53   : > { %1142 = dma.hbm_to_vmem [thread:$0]  (!%p1616_p13), %s1610_s11, 256, %s1612_s13, %s229_s26, %s1468_s5, %s1468_s5, %s1469_s30  }
  0x54   : > { %s1022_s10 = sshll.u32 %s1600_s27, 3  ;;  %s1023_s6 = sshll.u32 %s1458_s19, 7 }
  0x55   : > { %s1654_s9 = scalar_lea.hbm %s1908_s1, %s1023_s6  ;;  %s255_s22 = scalar_lea.vmem [#allocation6], %s1022_s10 }
  0x56   : > { %s263_s0 = sshll.u32 %s255_s22, 4  ;;  %s1931_s2 = sand.u32 1, %s1462_s20   ;;  %s264_s0 = int_to_ptr.vmem [resolvable:$true] %s263_s0 }
  0x57   : > { %s252_s29 = scalar_lea.sflag [#allocation7], %s1931_s2  ;;  %s1342_s7 = scalar_lea.hbm %s1654_s9, 128 }
  0x58   : > { %p1343_p7 = scmp.ne.s32.totalorder %s1654_s9, %s1342_s7  ;;  %s1347_s13 = scalar_lea.hbm %s1908_s1, 256 }
  0x59   : > { %p1348_p8 = scmp.lt.u32.totalorder %s1654_s9, %s1908_s1  ;;  %p1349_p11 = scmp.lt.u32.totalorder %s1347_s13, %s1342_s7 }
  0x5a   : > { %p1345_p4 = pnand %p1343_p7, %p1314_p3  ;;  %p1351_p0 = scmp.lt.u32.totalorder %s1342_s7, %s1654_s9 }
  0x5b   : > { %p1350_p12 = por %p1349_p11, %p1348_p8 }
  0x5c   : > { %p1346_p6 = pneg %p1345_p4 }
  0x5d   : > { %p1352_p5 = por %p1351_p0, %p1350_p12 }
  0x5f   : > { %p1353_p9 = pnand %p1352_p5, %p1346_p6 }
  0x61   : > { %1356 = shalt.err (!%p1353_p9)
}
  0x62   : > { %s1357_s2 = scalar_lea.vmem %s264_s0, 128  ;;  %s1470_s22 = smov [#allocation6]  }
  0x63   : > { %p1358_p1 = scmp.ne.s32.totalorder %s264_s0, %s1357_s2  ;;  %s1362_s30 = sshll.u32 %s1470_s22, 4  ;;  %s1363_s30 = int_to_ptr.vmem [resolvable:$false] %s1362_s30 }
  0x64   : > { %s1364_s10 = scalar_lea.vmem %s1363_s30, 256  ;;  %p1365_p4 = scmp.lt.s32.totalorder %s264_s0, %s1363_s30 }
  0x65   : > { %p1360_p2 = pnand %p1358_p1, %p1314_p3  ;;  %p1366_p10 = scmp.lt.s32.totalorder %s1364_s10, %s1357_s2 }
  0x67   : > { %p1361_p7 = pneg %p1360_p2  ;;  %p1367_p8 = por %p1366_p10, %p1365_p4 }
  0x69   : > { %p1368_p11 = pnand %p1367_p8, %p1361_p7 }
  0x6b   : > { %1371 = shalt.err (!%p1368_p11)
}
  0x6c   : > { %1145 = dma.hbm_to_vmem [thread:$0]  (!%p1616_p13), %s1654_s9, 128, %s264_s0, %s252_s29  }
  0x6d   : > { %p1932_p6 = scmp.ne.s32.totalorder %s1921_s25, 0 }
  0x6e   : > { %s1680_s7 = sand.u32 (!%p1932_p6), 1, %s1446_s16   ;;  %p1933_p10 = scmp.ne.s32.totalorder (!%p1932_p6), %s1919_s23, 0 }
  0x6f   : > { %272 = sbr.rel (%p1932_p6) target bundleno = 429 (0x1ad), region = 36  ;;  %s1025_s6 = sshll.u32 (!%p1932_p6), %s1680_s7, 4 }
  0x70   : > { %s275_s8 = scalar_lea.sflag (!%p1932_p6), [#allocation4], %s1680_s7  ;;  %s1684_s12 = scalar_lea.vmem (!%p1932_p6), [#allocation3], %s1025_s6 }
  0x76   : > { %1425 = dma.done.wait (%p1933_p10), %s275_s8, 256  }
  0x77   : > { %1427 = vsyncadd (%p1933_p10), %s275_s8, 4294967040  ;;  %s283_s0 = sand.u32 1, %s1531_s21   ;;  %s1026_s25 = sshll.u32 %s1680_s7, 3 }
  0x78   : > { %s284_s29 = scalar_lea.sflag [#allocation7], %s283_s0  ;;  %s1692_s14 = scalar_lea.vmem [#allocation6], %s1026_s25 }
  0x79   : > { %1429 = dma.done.wait (%p1933_p10), %s284_s29, 128  }
  0x7a   : > { %1431 = vsyncadd (%p1933_p10), %s284_s29, 4294967168  ;;  %p1934_p13 = scmp.eq.s32.totalorder %s1531_s21, 0 }
  0x7c   : > { %1433 = dma.done.wait (%p1934_p13), [#allocation7], 1024   ;;  %p1935_p3 = pmov %p1934_p13 }
  0x7d   : > { %v1471_v0 = vmov 1966171168   ;;  %v343_v2 = vlaneseq  ;;  %v1210_v3 = vld [vmem:[#allocation8] sm:$0xff]   ;;  %v1211_v4 = vld [vmem:[#allocation8 + $0x8] sm:$0xff]   ;;  %v1212_v7 = vld [vmem:[#allocation8 + $0x10] sm:$0xff]   ;;  %s1028_s21 = sshll.u32 %s1680_s7, 7 }
  0x7e   : > { %1435 = vsyncadd (%p1935_p3), [#allocation7], 4294966272  ;;  %v341_v1 = vunpack.c.l.s4 %v1471_v0  ;;  %1077 = vmatprep.subr.bf16.mxu0 %v1210_v3  ;;  %1109 = vmatprep.subr.bf16.mxu1 %v1210_v3  ;;  %v1213_v9 = vld [vmem:[#allocation8 + $0x18] sm:$0xff]   ;;  %v334_v10 = vld [vmem:[%s1684_s12] sm:$0xff]  ;;  %s1833_s27 = scalar_lea.vmem [#allocation9], %s1028_s21  ;;  %s1060_s11 = sshll.u32 %s1454_s18, 11 }
  0x7f   : > { %v344_v6 = vshrl.u32 %v343_v2, 7  ;;  %1078 = vmatpush3.bf16.msra.mxu0 %v1210_v3  ;;  %1117 = vmatpush3.bf16.msra.mxu1 %v1210_v3  ;;  %v335_v12 = vld [vmem:[%s1684_s12 + $0x8] sm:$0xff]  ;;  %v339_v13 = vcombine.high %v334_v10, %v334_v10  ;;  %v1214_v20 = vld [vmem:[#allocation8 + $0x20] sm:$0xff]   ;;  %v1712_v21 = vld [vmem:[%s1692_s14] sm:$0xff]  ;;  %s871_s13 = sshll.u32 %s1833_s27, 4  ;;  %s1852_s5 = scalar_lea.hbm %s1911_s4, %s1060_s11  ;;  %s1854_s13 = int_to_ptr.vmem [resolvable:$true] %s871_s13 }
  0x80   : > { %v342_v5 = vunpack.c.0.s8 %v341_v1  ;;  %1079 = vmatprep.subr.bf16.mxu0 %v1211_v4  ;;  %1110 = vmatprep.subr.bf16.mxu1 %v1211_v4  ;;  %v388_v15 = vcombine.high %v335_v12, %v335_v12  ;;  %v1215_v36 = vld [vmem:[#allocation8 + $0x28] sm:$0xff]   ;;  %v1216_v51 = vld [vmem:[#allocation8 + $0x30] sm:$0xff]   ;;  %v1217_v0 = vld [vmem:[#allocation8 + $0x38] sm:$0xff]   ;;  %s854_s2 = scalar_lea.sflag [#allocation5], %s1680_s7  ;;  %s1372_s22 = scalar_lea.vmem %s1854_s13, 2048 }
  0x81   : > { %v1705_v11 = vsub.s32 0, %v344_v6  ;;  %p1373_p12 = scmp.ne.s32.totalorder %s1854_s13, %s1372_s22  ;;  %p1936_p0 = scmp.ne.s32.totalorder %s1927_s28, 0 }
  0x82   : > { %v1702_v8 = vsub.s32 %v342_v5, %v344_v6  ;;  %s1472_s30 = smov [#allocation9]  }
  0x83   : > { %1080 = vmatpush3.bf16.msra.mxu0 %v1211_v4  ;;  %1118 = vmatpush3.bf16.msra.mxu1 %v1211_v4  ;;  %p1374_p5 = pnand %p1373_p12, %p1936_p0  ;;  %s1376_s10 = sshll.u32 %s1472_s30, 4  ;;  %s1377_s10 = int_to_ptr.vmem [resolvable:$false] %s1376_s10 }
  0x84   : > { %1081 = vmatprep.subr.bf16.mxu0 %v1212_v7  ;;  %1111 = vmatprep.subr.bf16.mxu1 %v1212_v7  ;;  %v346_v14 = vrot.slane %v334_v10, %v1702_v8  ;;  %v395_v16 = vrot.slane %v335_v12, %v1702_v8  ;;  %v353_v23 = vrot.slane %v339_v13, %v1702_v8  ;;  %s1378_s6 = scalar_lea.vmem %s1377_s10, 4096  ;;  %p1379_p1 = scmp.lt.s32.totalorder %s1854_s13, %s1377_s10 }
  0x85   : > { %v1717_v24 = vrot.slane %v388_v15, %v1702_v8  ;;  %p1375_p9 = pneg %p1374_p5  ;;  %p1380_p2 = scmp.lt.s32.totalorder %s1378_s6, %s1372_s22 }
  0x86   : > { %v354_v17 = vcombine.high %v346_v14, %v346_v14  ;;  %v362_v18 = vrot.slane %v346_v14, %v1702_v8  ;;  %v403_v19 = vcombine.high %v395_v16, %v395_v16  ;;  %v411_v22 = vrot.slane %v395_v16, %v1702_v8 }
  0x87   : > { %1082 = vmatpush3.bf16.msra.mxu0 %v1212_v7  ;;  %1119 = vmatpush3.bf16.msra.mxu1 %v1212_v7  ;;  %v355_v31 = vcombine.high %v353_v23, %v353_v23  ;;  %v1724_v32 = vrot.slane %v353_v23, %v1702_v8  ;;  %v404_v62 = vcombine.high %v1717_v24, %v1717_v24  ;;  %p1381_p7 = por %p1380_p2, %p1379_p1 }
  0x88   : > { %1083 = vmatprep.subr.bf16.mxu0 %v1213_v9  ;;  %1112 = vmatprep.subr.bf16.mxu1 %v1213_v9  ;;  %v376_v25 = vrot.slane %v354_v17, %v1702_v8  ;;  %v384_v26 = vcombine.high %v362_v18, %v362_v18  ;;  %v440_v27 = vrot.slane %v362_v18, %v1705_v11 }
  0x89   : > { %v425_v28 = vrot.slane %v403_v19, %v1702_v8  ;;  %v433_v29 = vcombine.high %v411_v22, %v411_v22  ;;  %v472_v30 = vrot.slane %v411_v22, %v1705_v11  ;;  %v383_v57 = vrot.slane %v355_v31, %v1702_v8  ;;  %p1382_p4 = pnand %p1381_p7, %p1375_p9 }
  0x8a   : > { %v386_v33 = vcombine.high %v376_v25, %v376_v25  ;;  %v444_v34 = vrot.slane %v376_v25, %v1705_v11  ;;  %v1728_v35 = vadd.f32 %v440_v27, %v1712_v21  ;;  %v448_v42 = vrot.slane %v384_v26, %v1705_v11 }
  0x8b   : > { %1084 = vmatpush3.bf16.msra.mxu0 %v1213_v9  ;;  %1120 = vmatpush3.bf16.msra.mxu1 %v1213_v9  ;;  %v435_v37 = vcombine.high %v425_v28, %v425_v28  ;;  %v476_v38 = vrot.slane %v425_v28, %v1705_v11  ;;  %v1732_v39 = vadd.f32 %v472_v30, %v1712_v21 }
  0x8c   : > { %1085 = vmatprep.subr.bf16.mxu0 %v1214_v20  ;;  %1113 = vmatprep.subr.bf16.mxu1 %v1214_v20  ;;  %v1735_v40 = vadd.f32 %v444_v34, %v1712_v21  ;;  %v1029_v41 = vmul.f32 -1.442695, %v1728_v35  ;;  %v452_v43 = vrot.slane %v386_v33, %v1705_v11  ;;  %v480_v46 = vrot.slane %v433_v29, %v1705_v11 }
  0x8d   : > { %v1741_v44 = vadd.f32 %v476_v38, %v1712_v21  ;;  %v1037_v45 = vmul.f32 -1.442695, %v1732_v39  ;;  %v484_v47 = vrot.slane %v435_v37, %v1705_v11  ;;  %v1748_v49 = vadd.f32 %v448_v42, %v1712_v21 }
  0x8e   : > { %1220 = vpow2.f32 %v1029_v41  ;;  %v1030_v48 = vmul.f32 -1.442695, %v1735_v40  ;;  %v1751_v50 = vadd.f32 %v452_v43, %v1712_v21  ;;  %v1755_v53 = vadd.f32 %v480_v46, %v1712_v21 }
  0x8f   : > { %1086 = vmatpush3.bf16.msra.mxu0 %v1214_v20  ;;  %1121 = vmatpush3.bf16.msra.mxu1 %v1214_v20  ;;  %1222 = vpow2.f32 %v1037_v45  ;;  %v1038_v52 = vmul.f32 -1.442695, %v1741_v44  ;;  %v1758_v54 = vadd.f32 %v484_v47, %v1712_v21  ;;  %v1031_v55 = vmul.f32 -1.442695, %v1748_v49 }
  0x90   : > { %1087 = vmatprep.subr.bf16.mxu0 %v1215_v36  ;;  %1114 = vmatprep.subr.bf16.mxu1 %v1215_v36  ;;  %1224 = vpow2.f32 %v1030_v48  ;;  %v1032_v56 = vmul.f32 -1.442695, %v1751_v50  ;;  %v1039_v58 = vmul.f32 -1.442695, %v1755_v53  ;;  %v456_v60 = vrot.slane %v1724_v32, %v1705_v11 }
  0x91   : > { %1226 = vpow2.f32 %v1038_v52  ;;  %v1040_v59 = vmul.f32 -1.442695, %v1758_v54  ;;  %v460_v61 = vrot.slane %v383_v57, %v1705_v11  ;;  %v418_v63 = vrot.slane %v1717_v24, %v1702_v8 }
  0x92   : > { %1228 = vpow2.f32 %v1031_v55  ;;  %v1773_v1 = vadd.f32 %v456_v60, %v1712_v21  ;;  %v432_v3 = vrot.slane %v404_v62, %v1702_v8  ;;  %v385_v9 = vcombine.high %v1724_v32, %v1724_v32 }
  0x93   : > { %1088 = vmatpush3.bf16.msra.mxu0 %v1215_v36  ;;  %1122 = vmatpush3.bf16.msra.mxu1 %v1215_v36  ;;  %1230 = vpow2.f32 %v1032_v56  ;;  %v1776_v2 = vadd.f32 %v460_v61, %v1712_v21  ;;  %v488_v4 = vrot.slane %v418_v63, %v1705_v11  ;;  %v387_v13 = vcombine.high %v383_v57, %v383_v57 }
  0x94   : > { %1089 = vmatprep.subr.bf16.mxu0 %v1216_v51  ;;  %1115 = vmatprep.subr.bf16.mxu1 %v1216_v51  ;;  %1232 = vpow2.f32 %v1039_v58  ;;  %v1033_v5 = vmul.f32 -1.442695, %v1773_v1  ;;  %v492_v8 = vrot.slane %v432_v3, %v1705_v11  ;;  %v434_v16 = vcombine.high %v418_v63, %v418_v63 }
  0x95   : > { %1234 = vpow2.f32 %v1040_v59  ;;  %v1034_v6 = vmul.f32 -1.442695, %v1776_v2  ;;  %v1783_v7 = vadd.f32 %v488_v4, %v1712_v21  ;;  %v464_v19 = vrot.slane %v385_v9, %v1705_v11 }
  0x96   : > { %1236 = vpow2.f32 %v1033_v5  ;;  %v436_v20 = vcombine.high %v432_v3, %v432_v3  ;;  %v1791_v24 = vadd.f32 %v492_v8, %v1712_v21  ;;  %v468_v27 = vrot.slane %v387_v13, %v1705_v11 }
  0x97   : > { %1090 = vmatpush3.bf16.msra.mxu0 %v1216_v51  ;;  %1123 = vmatpush3.bf16.msra.mxu1 %v1216_v51  ;;  %1238 = vpow2.f32 %v1034_v6  ;;  %v1041_v12 = vmul.f32 -1.442695, %v1783_v7  ;;  %v496_v30 = vrot.slane %v434_v16, %v1705_v11  ;;  %v1796_v33 = vadd.f32 %v464_v19, %v1712_v21 }
  0x98   : > { %1091 = vmatprep.subr.bf16.mxu0 %v1217_v0  ;;  %1116 = vmatprep.subr.bf16.mxu1 %v1217_v0  ;;  %v1221_v10 = vpop.eup %1220  ;;  %v500_v34 = vrot.slane %v436_v20, %v1705_v11  ;;  %v1042_v38 = vmul.f32 -1.442695, %v1791_v24  ;;  %v1801_v42 = vadd.f32 %v468_v27, %v1712_v21 }
  0x99   : > { %v1223_v14 = vpop.eup %1222  ;;  %v581_v15 = vadd.f32 1.0, %v1221_v10  ;;  %1240 = vpow2.f32 %v1041_v12  ;;  %v1804_v45 = vadd.f32 %v496_v30, %v1712_v21  ;;  %v1035_v11 = vmul.f32 -1.442695, %v1796_v33 }
  0x9a   : > { %v1225_v17 = vpop.eup %1224  ;;  %v589_v18 = vadd.f32 1.0, %v1223_v14  ;;  %v1808_v48 = vadd.f32 %v500_v34, %v1712_v21  ;;  %v1036_v55 = vmul.f32 -1.442695, %v1801_v42 }
  0x9b   : > { %1092 = vmatpush3.bf16.msra.mxu0 %v1217_v0  ;;  %1124 = vmatpush3.bf16.msra.mxu1 %v1217_v0  ;;  %v1227_v22 = vpop.eup %1226  ;;  %v582_v23 = vadd.f32 1.0, %v1225_v17  ;;  %1242 = vrcp.f32 %v581_v15  ;;  %v1043_v57 = vmul.f32 -1.442695, %v1804_v45 }
  0x9c   : > { %v1229_v25 = vpop.eup %1228  ;;  %v590_v26 = vadd.f32 1.0, %v1227_v22  ;;  %1244 = vrcp.f32 %v589_v18  ;;  %v1044_v60 = vmul.f32 -1.442695, %v1808_v48 }
  0x9d   : > { %v1231_v28 = vpop.eup %1230  ;;  %1246 = vrcp.f32 %v582_v23  ;;  %v583_v29 = vadd.f32 1.0, %v1229_v25 }
  0x9e   : > { %v1233_v31 = vpop.eup %1232  ;;  %1248 = vrcp.f32 %v590_v26  ;;  %v584_v32 = vadd.f32 1.0, %v1231_v28 }
  0x9f   : > { %v1235_v36 = vpop.eup %1234  ;;  %1250 = vrcp.f32 %v583_v29  ;;  %v591_v37 = vadd.f32 1.0, %v1233_v31 }
  0xa0   : > { %1252 = vrcp.f32 %v584_v32  ;;  %v592_v41 = vadd.f32 1.0, %v1235_v36  ;;  %v1237_v43 = vpop.eup %1236 }
  0xa1   : > { %1254 = vrcp.f32 %v591_v37  ;;  %v1239_v46 = vpop.eup %1238  ;;  %v585_v47 = vadd.f32 1.0, %v1237_v43 }
  0xa2   : > { %1256 = vrcp.f32 %v592_v41  ;;  %v586_v51 = vadd.f32 1.0, %v1239_v46 }
  0xa3   : > { %1258 = vpow2.f32 %v1042_v38  ;;  %v1241_v52 = vpop.eup %1240 }
  0xa4   : > { %1260 = vrcp.f32 %v585_v47  ;;  %v593_v0 = vadd.f32 1.0, %v1241_v52 }
  0xa5   : > { %v1243_v56 = vpop.eup %1242  ;;  %1262 = vrcp.f32 %v586_v51 }
  0xa6   : > { %v1245_v58 = vpop.eup %1244  ;;  %v629_v59 = vmul.f32 %v1243_v56, %v1728_v35  ;;  %1264 = vpow2.f32 %v1035_v11 }
  0xa7   : > { %v1247_v61 = vpop.eup %1246  ;;  %v637_v21 = vmul.f32 %v1245_v58, %v1732_v39  ;;  %1266 = vpow2.f32 %v1036_v55 }
  0xa8   : > { %v1249_v62 = vpop.eup %1248  ;;  %v630_v63 = vmul.f32 %v1247_v61, %v1735_v40  ;;  %1268 = vpow2.f32 %v1043_v57 }
  0xa9   : > { %v1251_v3 = vpop.eup %1250  ;;  %v638_v4 = vmul.f32 %v1249_v62, %v1741_v44  ;;  %1270 = vpow2.f32 %v1044_v60 }
  0xaa   : > { %v1253_v5 = vpop.eup %1252  ;;  %v645_v6 = vpack.c.bf16 %v630_v63, %v629_v59  ;;  %v631_v9 = vmul.f32 %v1251_v3, %v1748_v49  ;;  %1272 = vrcp.f32 %v593_v0 }
  0xab   : > { %v1255_v35 = vpop.eup %1254  ;;  %v649_v8 = vpack.c.bf16 %v638_v4, %v637_v21  ;;  %v632_v10 = vmul.f32 %v1253_v5, %v1751_v50 }
  0xac   : > { %v1257_v12 = vpop.eup %1256  ;;  %1093 = vmatprep.mubr.bf16.mxu0 %v645_v6  ;;  %v639_v39 = vmul.f32 %v1255_v35, %v1755_v53 }
  0xad   : > { %v1259_v40 = vpop.eup %1258  ;;  %1101 = vmatprep.mubr.bf16.mxu1 %v649_v8  ;;  %v646_v13 = vpack.c.bf16 %v632_v10, %v631_v9  ;;  %v640_v44 = vmul.f32 %v1257_v12, %v1758_v54 }
  0xae   : > { %v1261_v14 = vpop.eup %1260  ;;  %v594_v15 = vadd.f32 1.0, %v1259_v40 }
  0xaf   : > { %v1263_v16 = vpop.eup %1262  ;;  %1094 = vmatmul.mubr.bf16.vlgmr.msra.gmra.mrb[0].mxu0 %v646_v13  ;;  %v650_v49 = vpack.c.bf16 %v640_v44, %v639_v39  ;;  %v633_v17 = vmul.f32 %v1261_v14, %v1773_v1 }
  0xb0   : > { %v1265_v18 = vpop.eup %1264  ;;  %v634_v50 = vmul.f32 %v1263_v16, %v1776_v2  ;;  %1274 = vrcp.f32 %v594_v15 }
  0xb1   : > { %1102 = vmatmul.mubr.bf16.vlgmr.msra.gmra.mrb[0].mxu1 %v650_v49  ;;  %v587_v19 = vadd.f32 1.0, %v1265_v18  ;;  %v1267_v53 = vpop.eup %1266 }
  0xb2   : > { %v647_v20 = vpack.c.bf16 %v634_v50, %v633_v17  ;;  %v1269_v22 = vpop.eup %1268  ;;  %v588_v23 = vadd.f32 1.0, %v1267_v53 }
  0xb3   : > { %1276 = vrcp.f32 %v587_v19  ;;  %v1271_v25 = vpop.eup %1270  ;;  %v595_v54 = vadd.f32 1.0, %v1269_v22 }
  0xb4   : > { %1097 = vmatprep.mubr.bf16.mxu0 %v647_v20  ;;  %1278 = vrcp.f32 %v588_v23  ;;  %v596_v26 = vadd.f32 1.0, %v1271_v25  ;;  %v1273_v27 = vpop.eup %1272 }
  0xb5   : > { %1280 = vrcp.f32 %v595_v54  ;;  %v641_v1 = vmul.f32 %v1273_v27, %v1783_v7 }
  0xb6   : > { %1282 = vrcp.f32 %v596_v26 }
  0xba   : > { %v1275_v28 = vpop.eup %1274 }
  0xbb   : > { %v642_v2 = vmul.f32 %v1275_v28, %v1791_v24  ;;  %v1045_v24 = vld [vmem:[%s1910_s3] ss:$0 sm:$0xff] }
  0xbd   : > { %v1277_v29 = vpop.eup %1276  ;;  %v651_v30 = vpack.c.bf16 %v642_v2, %v641_v1 }
  0xbe   : > { %v635_v31 = vmul.f32 %v1277_v29, %v1796_v33  ;;  %v1279_v32 = vpop.eup %1278 }
  0xbf   : > { %1105 = vmatprep.mubr.bf16.mxu1 %v651_v30  ;;  %v1281_v34 = vpop.eup %1280  ;;  %v636_v36 = vmul.f32 %v1279_v32, %v1801_v42 }
  0xc0   : > { %v1283_v37 = vpop.eup %1282  ;;  %v643_v38 = vmul.f32 %v1281_v34, %v1804_v45 }
  0xc1   : > { %v648_v41 = vpack.c.bf16 %v636_v36, %v635_v31  ;;  %v644_v43 = vmul.f32 %v1283_v37, %v1808_v48 }
  0xc3   : > { %1098 = vmatmul.mubr.bf16.gmra.mrb[4].mxu0 %v648_v41  ;;  %v652_v7 = vpack.c.bf16 %v644_v43, %v643_v38 }
  0xc5   : > { %1106 = vmatmul.mubr.bf16.gmra.mrb[4].mxu1 %v652_v7 }
 0x182   : > { %v1095_v33 = vpop.f32.mrb[0].mxu0 }
 0x183   : > { %v783_v46 = vadd.f32 %v1095_v33, %v1045_v24  ;;  %v774_v47 = vpop.f32.mrb[1].mxu0 }
 0x184   : > { %v1103_v11 = vpop.f32.mrb[0].mxu1  ;;  %v775_v51 = vadd.f32 %v1045_v24, %v774_v47  ;;  %v1096_v42 = vpop.f32.mrb[2].mxu0 }
 0x185   : > { %839 = vst [vmem:[%s1833_s27 + $0x10] sm:$0xff] %v783_v46  ;;  %v815_v45 = vadd.f32 %v1103_v11, %v1045_v24  ;;  %v806_v48 = vpop.f32.mrb[1].mxu1  ;;  %v786_v52 = vadd.f32 %v1096_v42, %v1045_v24  ;;  %v777_v55 = vpop.f32.mrb[3].mxu0 }
 0x186   : > { %837 = vst [vmem:[%s1833_s27] sm:$0xff] %v775_v51  ;;  %v807_v56 = vadd.f32 %v1045_v24, %v806_v48  ;;  %v1104_v57 = vpop.f32.mrb[2].mxu1  ;;  %v778_v58 = vadd.f32 %v1045_v24, %v777_v55 }
 0x187   : > { %847 = vst [vmem:[%s1833_s27 + $0x50] sm:$0xff] %v815_v45  ;;  %840 = vst [vmem:[%s1833_s27 + $0x18] sm:$0xff] %v786_v52  ;;  %v818_v59 = vadd.f32 %v1104_v57, %v1045_v24  ;;  %v809_v60 = vpop.f32.mrb[3].mxu1 }
 0x188   : > { %845 = vst [vmem:[%s1833_s27 + $0x40] sm:$0xff] %v807_v56  ;;  %838 = vst [vmem:[%s1833_s27 + $0x8] sm:$0xff] %v778_v58  ;;  %v810_v61 = vadd.f32 %v1045_v24, %v809_v60 }
 0x189   : > { %848 = vst [vmem:[%s1833_s27 + $0x58] sm:$0xff] %v818_v59 }
 0x18a   : > { %846 = vst [vmem:[%s1833_s27 + $0x48] sm:$0xff] %v810_v61 }
 0x196   : > { %v1099_v21 = vpop.f32.mrb[4].mxu0 }
 0x197   : > { %v799_v62 = vadd.f32 %v1099_v21, %v1045_v24  ;;  %v790_v63 = vpop.f32.mrb[5].mxu0 }
 0x198   : > { %v1107_v0 = vpop.f32.mrb[4].mxu1  ;;  %v791_v3 = vadd.f32 %v1045_v24, %v790_v63  ;;  %v1100_v4 = vpop.f32.mrb[6].mxu0 }
 0x199   : > { %843 = vst [vmem:[%s1833_s27 + $0x30] sm:$0xff] %v799_v62  ;;  %v831_v5 = vadd.f32 %v1107_v0, %v1045_v24  ;;  %v822_v6 = vpop.f32.mrb[5].mxu1  ;;  %v802_v9 = vadd.f32 %v1100_v4, %v1045_v24  ;;  %v793_v35 = vpop.f32.mrb[7].mxu0 }
 0x19a   : > { %841 = vst [vmem:[%s1833_s27 + $0x20] sm:$0xff] %v791_v3  ;;  %v823_v8 = vadd.f32 %v1045_v24, %v822_v6  ;;  %v1108_v10 = vpop.f32.mrb[6].mxu1  ;;  %v794_v12 = vadd.f32 %v1045_v24, %v793_v35 }
 0x19b   : > { %851 = vst [vmem:[%s1833_s27 + $0x70] sm:$0xff] %v831_v5  ;;  %844 = vst [vmem:[%s1833_s27 + $0x38] sm:$0xff] %v802_v9  ;;  %v834_v39 = vadd.f32 %v1108_v10, %v1045_v24  ;;  %v825_v40 = vpop.f32.mrb[7].mxu1 }
 0x19c   : > { %849 = vst [vmem:[%s1833_s27 + $0x60] sm:$0xff] %v823_v8  ;;  %842 = vst [vmem:[%s1833_s27 + $0x28] sm:$0xff] %v794_v12  ;;  %v826_v13 = vadd.f32 %v1045_v24, %v825_v40 }
 0x19d   : > { %852 = vst [vmem:[%s1833_s27 + $0x78] sm:$0xff] %v834_v39 }
 0x19e   : > { %850 = vst [vmem:[%s1833_s27 + $0x68] sm:$0xff] %v826_v13 }
 0x19f   : > { %1385 = shalt.err (!%p1382_p4)
}
 0x1a0   : > { %s1386_s8 = scalar_lea.hbm %s1852_s5, 2048  ;;  %s1390_s25 = scalar_lea.hbm %s1911_s4, 4096 }
 0x1a1   : > { %p1387_p8 = scmp.ne.s32.totalorder %s1852_s5, %s1386_s8  ;;  %p1391_p10 = scmp.lt.u32.totalorder %s1852_s5, %s1911_s4 }
 0x1a2   : > { %p1392_p13 = scmp.lt.u32.totalorder %s1390_s25, %s1386_s8  ;;  %p1394_p12 = scmp.lt.u32.totalorder %s1386_s8, %s1852_s5 }
 0x1a3   : > { %p1388_p11 = pnand %p1387_p8, %p1936_p0 }
 0x1a4   : > { %p1393_p3 = por %p1392_p13, %p1391_p10 }
 0x1a5   : > { %p1389_p6 = pneg %p1388_p11 }
 0x1a6   : > { %p1395_p5 = por %p1394_p12, %p1393_p3 }
 0x1a8   : > { %p1396_p9 = pnand %p1395_p5, %p1389_p6 }
 0x1aa   : > { %1399 = shalt.err (!%p1396_p9)
}
 0x1ab   : > { %s1473_s21 = smov 128   ;;  %s1474_s23 = smov 8  }
 0x1ac   : > { %1133 = dma.vmem_to_hbm [thread:$0]  (%p1936_p0), %s1854_s13, 2048, %s1852_s5, %s854_s2, %s1473_s21, %s1473_s21, %s1474_s23  }
 0x1ad PF: > { %s886_s9 = sand.u32 1, %s1442_s15   ;;  %p1937_p1 = scmp.ne.s32.totalorder %s1920_s24, 0 }
 0x1ae   : > { %p1938_p2 = scmp.ge.s32.totalorder %s1462_s20, 2  ;;  %s887_s27 = scalar_lea.sflag [#allocation5], %s886_s9 }
 0x1b0   : > { %p1147_p7 = pnand %p1938_p2, %p1937_p1 }
 0x1b2   : > { %1437 = dma.done.wait (!%p1147_p7), %s887_s27, 2048  }
 0x1b3   : > { %1439 = vsyncadd (!%p1147_p7), %s887_s27, 4294965248  ;;  %s23_s20 = sadd.s32 1, %s1462_s20   ;;  %s1939_s11 = sld [smem:[#allocation15_spill]] }
 0x1b4   : > { %p20_p4 = scmp.ge.s32.totalorder %s23_s20, 4   ;;  %s1940_s28 = sld [smem:[#allocation14_spill]] }
 0x1b5   : > { %s1941_s15 = smov %s1446_s16  ;;  %s1942_s16 = smov %s1450_s17 }
 0x1b6   : > { %s1944_s18 = smov %s1458_s19  ;;  %22 = sbr.rel (!%p20_p4) target bundleno = 11 (0xb), region = 106 }
 0x1b9   : > { %s1943_s17 = smov %s1939_s11 }
 0x1ba   : > { %s1945_s19 = smov %s1940_s28 }
 0x1bd   :  { %892 = vsyncpa [#allocation4], 1 }
 0x1be   :  { %894 = vsyncpa [#allocation4 + $0x1], 1 }
 0x1bf   :  { %895 = vsyncpa [#allocation7], 1 }
 0x1c0   :  { %897 = vsyncpa [#allocation7 + $0x1], 1 }
 0x1c1   :  { %898 = vsyncpa [#allocation5], 1 }
 0x1c2   :  { %900 = vsyncpa [#allocation5 + $0x1], 1 }

</bundles_post_ra>
